<compile_context>
chip_gen: v7x
topology: tpu7x:2x2x1
jax: 0.10.0
libtpu: 0.0.40
codegen_flags: <defaults>
</compile_context>

<pallas_src>
import functools

import jax
import jax.numpy as jnp
from jax import lax
from jax.experimental import pallas as pl
from jax.experimental.pallas import tpu as pltpu

BN_EPS = 1e-5
M_TILE = 256  # output-pixel rows (lane axis) per grid step; multiple of 128


def _encoder_kernel(wT_ref, patchesT_ref, gamma_ref, beta_ref, out_ref,
                    sum_ref, sumsq_ref, *, m_true):
    t = pl.program_id(0)
    nt = pl.num_programs(0)

    @pl.when(t == 0)
    def _init():
        sum_ref[...] = jnp.zeros_like(sum_ref)
        sumsq_ref[...] = jnp.zeros_like(sumsq_ref)

    # Conv-as-matmul on the MXU: (Cout_p, KP) @ (KP, M_TILE) -> (Cout_p, M_TILE)
    acc = jnp.dot(wT_ref[...], patchesT_ref[...], preferred_element_type=jnp.float32)

    # One-pass BN statistics (sum and sum of squares); cross-lane reduces go to the XLU.
    sum_ref[...] += jnp.sum(acc, axis=1, keepdims=True)
    sumsq_ref[...] += jnp.sum(acc * acc, axis=1, keepdims=True)

    # Stash the raw conv tile into the VMEM-resident, lane-dense output block.
    off = pl.multiple_of(t * M_TILE, M_TILE)
    out_ref[:, pl.ds(off, M_TILE)] = acc

    @pl.when(t == nt - 1)
    def _finalize():
        inv_m = jnp.float32(1.0 / m_true)
        mean = sum_ref[...] * inv_m                      # (Cout_p, 1)
        var = sumsq_ref[...] * inv_m - mean * mean       # biased variance (PyTorch training BN)
        inv = lax.rsqrt(var + BN_EPS)
        scale = gamma_ref[...] * inv                     # gamma / sqrt(var + eps)
        shift = beta_ref[...] - mean * scale
        # Conv bias is exactly cancelled by the mean subtraction (folded into `shift`);
        # LeakyReLU(slope=1) is the identity -> no activation pass.
        out_ref[...] = out_ref[...] * scale + shift


def encoder_block(x_nchw, w, b, gamma, beta, *, stride, padding):
    """x: (N, Cin, H, W); w: (Cout, Cin, KH, KW); b/gamma/beta: (Cout,).

    NOTE: the conv bias `b` is intentionally not applied — training-mode BatchNorm
    subtracts the per-channel batch mean, which cancels a constant per-channel shift
    exactly (and leaves the variance unchanged).
    """
    del b  # mathematically a no-op under training-mode BN
    N, Cin, H, W = x_nchw.shape
    Cout, _, KH, KW = w.shape
    OH = (H + 2 * padding - KH) // stride + 1
    OW = (W + 2 * padding - KW) // stride + 1
    M = N * OH * OW
    K = KH * KW * Cin

    KP = ((K + 127) // 128) * 128          # contraction depth padded to a multiple of 128
    Cout_p = ((Cout + 7) // 8) * 8         # channels padded to the 8-sublane granule
    M_pad = ((M + M_TILE - 1) // M_TILE) * M_TILE
    num_tiles = M_pad // M_TILE

    # ---- glue (plain JAX): im2col, built directly in transposed (K, M) layout ----
    # TODO(synk): fuse im2col into the kernel (KH*KW shifted matmuls over the padded
    # NHWC input) to remove the KH*KW x HBM expansion of the patches array.
    x_nhwc = jnp.transpose(x_nchw, (0, 2, 3, 1)).astype(jnp.float32)
    x_sp = jnp.pad(x_nhwc, ((0, 0), (padding, padding), (padding, padding), (0, 0)))
    cols = []
    for kh in range(KH):
        for kw in range(KW):
            sl = x_sp[:, kh:kh + (OH - 1) * stride + 1:stride,
                         kw:kw + (OW - 1) * stride + 1:stride, :]   # (N, OH, OW, Cin)
            cols.append(sl)
    patches = jnp.stack(cols, axis=0)                                # (KH*KW, N, OH, OW, Cin)
    patchesT = jnp.transpose(patches, (0, 4, 1, 2, 3)).reshape(K, M)  # k=(kh,kw,ci), m=(n,oh,ow)
    patchesT = jnp.pad(patchesT, ((0, KP - K), (0, M_pad - M)))

    wT = jnp.transpose(w, (0, 2, 3, 1)).reshape(Cout, K).astype(jnp.float32)
    wT = jnp.pad(wT, ((0, Cout_p - Cout), (0, KP - K)))
    gamma2 = jnp.pad(gamma.astype(jnp.float32), (0, Cout_p - Cout),
                     constant_values=1.0).reshape(Cout_p, 1)
    beta2 = jnp.pad(beta.astype(jnp.float32), (0, Cout_p - Cout)).reshape(Cout_p, 1)

    kernel = functools.partial(_encoder_kernel, m_true=M)

    flops = 2 * Cout_p * KP * M_pad + 6 * Cout_p * M_pad
    bytes_accessed = 4 * (patchesT.size + wT.size + Cout_p * M_pad + 4 * Cout_p)

    out = pl.pallas_call(
        kernel,
        out_shape=jax.ShapeDtypeStruct((Cout_p, M_pad), jnp.float32),
        grid_spec=pltpu.PrefetchScalarGridSpec(
            num_scalar_prefetch=0,
            grid=(num_tiles,),
            in_specs=[
                pl.BlockSpec((Cout_p, KP), lambda t: (0, 0)),      # weights: VMEM-resident
                pl.BlockSpec((KP, M_TILE), lambda t: (0, t)),      # patches: streamed over M
                pl.BlockSpec((Cout_p, 1), lambda t: (0, 0)),       # gamma
                pl.BlockSpec((Cout_p, 1), lambda t: (0, 0)),       # beta
            ],
            # Lane-dense output, resident across the grid, written back once.
            out_specs=pl.BlockSpec((Cout_p, M_pad), lambda t: (0, 0)),
            scratch_shapes=[
                pltpu.VMEM((Cout_p, 1), jnp.float32),   # running per-channel sum
                pltpu.VMEM((Cout_p, 1), jnp.float32),   # running per-channel sum of squares
            ],
        ),
        compiler_params=pltpu.CompilerParams(
            # Stats accumulation + resident output => the M-tile axis must stay serial.
            # TODO(synk): a v7x megacore split would need a cross-core stats combine.
            dimension_semantics=("arbitrary",),
            vmem_limit_bytes=32 * 1024 * 1024,
        ),
        cost_estimate=pl.CostEstimate(flops=flops, transcendentals=Cout_p,
                                      bytes_accessed=bytes_accessed),
    )(wT, patchesT, gamma2, beta2)

    out = out[:Cout, :M].reshape(Cout, N, OH, OW)
    return jnp.transpose(out, (1, 0, 2, 3))


def _reference(x_nchw, w, b, gamma, beta, *, stride, padding):
    """Pure-JAX reference mirroring PyTorch semantics (training-mode BN)."""
    conv = lax.conv_general_dilated(
        x_nchw.astype(jnp.float32), w.astype(jnp.float32),
        window_strides=(stride, stride),
        padding=[(padding, padding), (padding, padding)],
        dimension_numbers=("NCHW", "OIHW", "NCHW"),
    ) + b.reshape(1, -1, 1, 1)
    mean = jnp.mean(conv, axis=(0, 2, 3), keepdims=True)
    var = jnp.mean((conv - mean) ** 2, axis=(0, 2, 3), keepdims=True)
    y = (conv - mean) * lax.rsqrt(var + BN_EPS)
    y = y * gamma.reshape(1, -1, 1, 1) + beta.reshape(1, -1, 1, 1)
    return jnp.where(y >= 0, y, 1.0 * y)   # LeakyReLU(1) == identity


if __name__ == "__main__":
    # EncoderBlock(in_channels=4, out_channels=8, kernel_size=3, stride=1, padding=1)
    N, Cin, H, W = 2, 4, 16, 16
    Cout, KH, KW = 8, 3, 3
    stride, padding = 1, 1

    key = jax.random.PRNGKey(0)
    kx, kw, kb, kg, kbe = jax.random.split(key, 5)
    x = jax.random.normal(kx, (N, Cin, H, W), dtype=jnp.float32)
    w = jax.random.normal(kw, (Cout, Cin, KH, KW), dtype=jnp.float32) * 0.1
    b = jax.random.normal(kb, (Cout,), dtype=jnp.float32) * 0.1
    gamma = 1.0 + 0.1 * jax.random.normal(kg, (Cout,), dtype=jnp.float32)
    beta = 0.1 * jax.random.normal(kbe, (Cout,), dtype=jnp.float32)

    out = encoder_block(x, w, b, gamma, beta, stride=stride, padding=padding)
    out = jax.block_until_ready(out)

    ref = _reference(x, w, b, gamma, beta, stride=stride, padding=padding)
    assert out.shape == (N, Cout, H, W), out.shape
    err = float(jnp.max(jnp.abs(out - ref)))
    assert err < 1e-3, err

    print("KERNEL_OK")
</pallas_src>

<mosaic_0001>
module attributes {stable_mosaic.version = 11 : i64} {
  func.func @_encoder_kernel(%arg0: i32, %arg1: memref<8x128xf32, #tpu.memory_space<vmem>>, %arg2: memref<128x256xf32, #tpu.memory_space<vmem>>, %arg3: memref<8x1xf32, #tpu.memory_space<vmem>>, %arg4: memref<8x1xf32, #tpu.memory_space<vmem>>, %arg5: memref<8x512xf32, #tpu.memory_space<vmem>>, %arg6: memref<8x1xf32, #tpu.memory_space<vmem>>, %arg7: memref<8x1xf32, #tpu.memory_space<vmem>>) attributes {dimension_semantics = [#tpu.dimension_semantics<arbitrary>], iteration_bounds = array<i64: 2>, scalar_prefetch = 0 : i64, scratch_operands = 2 : i64, tpu.core_type = #tpu.core_type<tc>, window_params = [{pipeline_mode = #tpu.pipeline_mode<synchronous>, transform_indices = @transform_0, window_bounds = array<i64: 8, 128>}, {transform_indices = @transform_1, window_bounds = array<i64: 128, 256>}, {pipeline_mode = #tpu.pipeline_mode<synchronous>, transform_indices = @transform_2, window_bounds = array<i64: 8, 1>}, {pipeline_mode = #tpu.pipeline_mode<synchronous>, transform_indices = @transform_3, window_bounds = array<i64: 8, 1>}, {pipeline_mode = #tpu.pipeline_mode<synchronous>, transform_indices = @transform_4, window_bounds = array<i64: 8, 512>}]} {
    %c0_i32 = arith.constant 0 : i32
    %0 = arith.cmpi eq, %arg0, %c0_i32 : i32
    %1 = arith.extui %0 : i1 to i32
    %c0_i32_0 = arith.constant 0 : i32
    %2 = arith.cmpi ne, %1, %c0_i32_0 : i32
    scf.if %2 {
      %cst_16 = arith.constant 0.000000e+00 : f32
      %24 = vector.broadcast %cst_16 : f32 to vector<8x1xf32>
      %c0_17 = arith.constant 0 : index
      %c0_18 = arith.constant 0 : index
      %25 = vector.load %arg6[%c0_17, %c0_18] : memref<8x1xf32, #tpu.memory_space<vmem>>, vector<8x1xf32>
      tpu.vector_store %arg6[%c0_17, %c0_18], %24 {strides = array<i32>} : memref<8x1xf32, #tpu.memory_space<vmem>>, vector<8x1xf32>,
      %cst_19 = arith.constant 0.000000e+00 : f32
      %26 = vector.broadcast %cst_19 : f32 to vector<8x1xf32>
      %c0_20 = arith.constant 0 : index
      %c0_21 = arith.constant 0 : index
      %27 = vector.load %arg7[%c0_20, %c0_21] : memref<8x1xf32, #tpu.memory_space<vmem>>, vector<8x1xf32>
      tpu.vector_store %arg7[%c0_20, %c0_21], %26 {strides = array<i32>} : memref<8x1xf32, #tpu.memory_space<vmem>>, vector<8x1xf32>,
    } else {
    }
    %c0 = arith.constant 0 : index
    %c0_1 = arith.constant 0 : index
    %3 = vector.load %arg1[%c0, %c0_1] : memref<8x128xf32, #tpu.memory_space<vmem>>, vector<8x128xf32>
    %c0_2 = arith.constant 0 : index
    %c0_3 = arith.constant 0 : index
    %4 = vector.load %arg2[%c0_2, %c0_3] : memref<128x256xf32, #tpu.memory_space<vmem>>, vector<128x256xf32>
    %cst = arith.constant dense<0.000000e+00> : vector<8x256xf32>
    %5 = tpu.matmul %3, %4, %cst {dimension_numbers = #tpu.dot_dimension_numbers<[1], [0], [0], [1], [0, 0, 1, 1], [], []>} : vector<8x128xf32>, vector<128x256xf32>, vector<8x256xf32> -> vector<8x256xf32>
    %c0_4 = arith.constant 0 : index
    %c0_5 = arith.constant 0 : index
    %6 = vector.load %arg6[%c0_4, %c0_5] : memref<8x1xf32, #tpu.memory_space<vmem>>, vector<8x1xf32>
    %cst_6 = arith.constant dense<0.000000e+00> : vector<8xf32>
    %7 = vector.multi_reduction <add>, %5, %cst_6 [1] : vector<8x256xf32> to vector<8xf32>
    %8 = vector.shape_cast %7 : vector<8xf32> to vector<8x1xf32>
    %9 = arith.addf %6, %8 : vector<8x1xf32>
    %c0_7 = arith.constant 0 : index
    %c0_8 = arith.constant 0 : index
    %10 = vector.load %arg6[%c0_7, %c0_8] : memref<8x1xf32, #tpu.memory_space<vmem>>, vector<8x1xf32>
    tpu.vector_store %arg6[%c0_7, %c0_8], %9 {strides = array<i32>} : memref<8x1xf32, #tpu.memory_space<vmem>>, vector<8x1xf32>,
    %c0_9 = arith.constant 0 : index
    %c0_10 = arith.constant 0 : index
    %11 = vector.load %arg7[%c0_9, %c0_10] : memref<8x1xf32, #tpu.memory_space<vmem>>, vector<8x1xf32>
    %12 = arith.mulf %5, %5 : vector<8x256xf32>
    %cst_11 = arith.constant dense<0.000000e+00> : vector<8xf32>
    %13 = vector.multi_reduction <add>, %12, %cst_11 [1] : vector<8x256xf32> to vector<8xf32>
    %14 = vector.shape_cast %13 : vector<8xf32> to vector<8x1xf32>
    %15 = arith.addf %11, %14 : vector<8x1xf32>
    %c0_12 = arith.constant 0 : index
    %c0_13 = arith.constant 0 : index
    %16 = vector.load %arg7[%c0_12, %c0_13] : memref<8x1xf32, #tpu.memory_space<vmem>>, vector<8x1xf32>
    tpu.vector_store %arg7[%c0_12, %c0_13], %15 {strides = array<i32>} : memref<8x1xf32, #tpu.memory_space<vmem>>, vector<8x1xf32>,
    %c256_i32 = arith.constant 256 : i32
    %17 = arith.muli %arg0, %c256_i32 : i32
    %18 = tpu.assume_multiple %17, 256 : i32
    %c0_14 = arith.constant 0 : index
    %19 = arith.index_cast %18 : i32 to index
    %20 = vector.load %arg5[%c0_14, %19] : memref<8x512xf32, #tpu.memory_space<vmem>>, vector<8x256xf32>
    tpu.vector_store %arg5[%c0_14, %19], %5 {strides = array<i32>} : memref<8x512xf32, #tpu.memory_space<vmem>>, vector<8x256xf32>,
    %c1_i32 = arith.constant 1 : i32
    %21 = arith.cmpi eq, %arg0, %c1_i32 : i32
    %22 = arith.extui %21 : i1 to i32
    %c0_i32_15 = arith.constant 0 : i32
    %23 = arith.cmpi ne, %22, %c0_i32_15 : i32
    scf.if %23 {
      %c0_16 = arith.constant 0 : index
      %c0_17 = arith.constant 0 : index
      %24 = vector.load %arg6[%c0_16, %c0_17] : memref<8x1xf32, #tpu.memory_space<vmem>>, vector<8x1xf32>
      %cst_18 = arith.constant 0.001953125 : f32
      %25 = vector.broadcast %cst_18 : f32 to vector<8x1xf32>
      %26 = arith.mulf %24, %25 : vector<8x1xf32>
      %c0_19 = arith.constant 0 : index
      %c0_20 = arith.constant 0 : index
      %27 = vector.load %arg7[%c0_19, %c0_20] : memref<8x1xf32, #tpu.memory_space<vmem>>, vector<8x1xf32>
      %cst_21 = arith.constant 0.001953125 : f32
      %28 = vector.broadcast %cst_21 : f32 to vector<8x1xf32>
      %29 = arith.mulf %27, %28 : vector<8x1xf32>
      %30 = arith.mulf %26, %26 : vector<8x1xf32>
      %31 = arith.subf %29, %30 : vector<8x1xf32>
      %cst_22 = arith.constant 9.99999974E-6 : f32
      %32 = vector.broadcast %cst_22 : f32 to vector<8x1xf32>
      %33 = arith.addf %31, %32 : vector<8x1xf32>
      %34 = math.rsqrt %33 : vector<8x1xf32>
      %c0_23 = arith.constant 0 : index
      %c0_24 = arith.constant 0 : index
      %35 = vector.load %arg3[%c0_23, %c0_24] : memref<8x1xf32, #tpu.memory_space<vmem>>, vector<8x1xf32>
      %36 = arith.mulf %35, %34 : vector<8x1xf32>
      %c0_25 = arith.constant 0 : index
      %c0_26 = arith.constant 0 : index
      %37 = vector.load %arg4[%c0_25, %c0_26] : memref<8x1xf32, #tpu.memory_space<vmem>>, vector<8x1xf32>
      %38 = arith.mulf %26, %36 : vector<8x1xf32>
      %39 = arith.subf %37, %38 : vector<8x1xf32>
      %c0_27 = arith.constant 0 : index
      %c0_28 = arith.constant 0 : index
      %40 = vector.load %arg5[%c0_27, %c0_28] : memref<8x512xf32, #tpu.memory_space<vmem>>, vector<8x512xf32>
      %41 = vector.broadcast %36 : vector<8x1xf32> to vector<8x512xf32>
      %42 = arith.mulf %40, %41 : vector<8x512xf32>
      %43 = vector.broadcast %39 : vector<8x1xf32> to vector<8x512xf32>
      %44 = arith.addf %42, %43 : vector<8x512xf32>
      %c0_29 = arith.constant 0 : index
      %c0_30 = arith.constant 0 : index
      %45 = vector.load %arg5[%c0_29, %c0_30] : memref<8x512xf32, #tpu.memory_space<vmem>>, vector<8x512xf32>
      tpu.vector_store %arg5[%c0_29, %c0_30], %44 {strides = array<i32>} : memref<8x512xf32, #tpu.memory_space<vmem>>, vector<8x512xf32>,
    } else {
    }
    return
  }
  func.func @transform_0(%arg0: i32) -> (i32, i32) {
    %c0_i32 = arith.constant 0 : i32
    %c0_i32_0 = arith.constant 0 : i32
    %c0_i32_1 = arith.constant 0 : i32
    return %c0_i32, %c0_i32_0 : i32, i32
  }
  func.func @transform_1(%arg0: i32) -> (i32, i32) {
    %c0_i32 = arith.constant 0 : i32
    %c0_i32_0 = arith.constant 0 : i32
    return %c0_i32, %arg0 : i32, i32
  }
  func.func @transform_2(%arg0: i32) -> (i32, i32) {
    %c0_i32 = arith.constant 0 : i32
    %c0_i32_0 = arith.constant 0 : i32
    %c0_i32_1 = arith.constant 0 : i32
    return %c0_i32, %c0_i32_0 : i32, i32
  }
  func.func @transform_3(%arg0: i32) -> (i32, i32) {
    %c0_i32 = arith.constant 0 : i32
    %c0_i32_0 = arith.constant 0 : i32
    %c0_i32_1 = arith.constant 0 : i32
    return %c0_i32, %c0_i32_0 : i32, i32
  }
  func.func @transform_4(%arg0: i32) -> (i32, i32) {
    %c0_i32 = arith.constant 0 : i32
    %c0_i32_0 = arith.constant 0 : i32
    %c0_i32_1 = arith.constant 0 : i32
    return %c0_i32, %c0_i32_0 : i32, i32
  }
}

</mosaic_0001>

<bundles_post_ra>
// kernel: tpu_custom_call.1
= control target key start
LH: loop header
LB: loop body
LE: loop exit
PB: predicated region body
PF: predicated region fallthrough
CT: control target
= control target key end

     0   :  { %9 = vsyncpa [#allocation5], 0  ;;  %s843_s0 = inlined_call_operand.vmem [shape: f32[8,128], index: 0, kind: input, shape index: {}]   ;;  %s844_s1 = inlined_call_operand.hbm [shape: f32[128,512], index: 1, kind: input, shape index: {}]   ;;  %s845_s2 = inlined_call_operand.vmem [shape: f32[8,1], index: 2, kind: input, shape index: {}]   ;;  %s846_s3 = inlined_call_operand.vmem [shape: f32[8,1], index: 3, kind: input, shape index: {}]   ;;  %s847_s4 = inlined_call_operand.hbm [shape: f32[8,512], index: 4, kind: output, shape index: {}]  }
   0x1   :  { %11 = vsyncpa [#allocation5 + $0x1], 0 }
   0x2   :  { %12 = vsyncpa [#allocation6], 0  ;;  %s673_s15 = smov 0   ;;  %s675_s16 = smov 0  }
   0x3   :  { %s677_s17 = smov 0   ;;  %s679_s18 = smov 0  }
   0x4 LB: > { %s692_s19 = sadd.s32 4294967295, %s638_s18   ;;  %s695_s20 = sadd.s32 1, %s638_s18   ;;  %s638_s18 = sphi %s679_s18, %s853_s18   ;;  %s634_s17 = sphi %s677_s17, %s852_s17   ;;  %s630_s16 = sphi %s675_s16, %s851_s16   ;;  %s626_s15 = sphi %s673_s15, %s850_s15  }
   0x5   : > { %s43_s21 = ssub.s32 %s638_s18, %s695_s20  ;;  %s46_s22 = sadd.s32 1, %s634_s17 }
   0x6   : > { %p44_p0 = scmp.eq.s32.totalorder %s43_s21, 0  ;;  %p53_p1 = scmp.ne.s32.totalorder %s634_s17, %s630_s16 }
   0x7   : > { %p54_p2 = scmp.eq.s32.totalorder %s638_s18, 0  ;;  %p59_p3 = scmp.ne.s32.totalorder %s630_s16, %s626_s15 }
   0x8   : > { %s705_s23 = scalar_select %p44_p0, %s634_s17, %s46_s22  }
   0x9   : > { %p55_p4 = por %p54_p2, %p53_p1  ;;  %p60_p5 = scmp.eq.s32.totalorder %s692_s19, 0 }
   0xa   : > { %p499_p6 = scmp.lt.s32.totalorder %s638_s18, 2  ;;  %s155_s25 = sand.u32 1, %s634_s17  }
   0xb   : > { %p709_p7 = por %p60_p5, %p59_p3  ;;  %s443_s26 = sshll.u32 %s155_s25, 8 }
   0xc   : > { %s456_s27 = sshll.u32 %s638_s18, 8  ;;  %s159_s5 = scalar_lea.vmem [#allocation4], %s443_s26 }
   0xd   : > { %s718_s30 = scalar_lea.hbm %s844_s1, %s456_s27  ;;  %s166_s6 = sshll.u32 %s159_s5, 4  ;;  %s720_s6 = int_to_ptr.vmem [resolvable:$true] %s166_s6 }
   0xe   : > { %p722_p8 = pnand %p499_p6, %p55_p4  ;;  %s726_s8 = scalar_lea.sflag [#allocation5], %s155_s25 }
   0xf   : > { %s544_s9 = scalar_lea.hbm %s718_s30, 4096  ;;  %s549_s12 = scalar_lea.hbm %s844_s1, 8192 }
  0x10   : > { %p545_p9 = scmp.ne.s32.totalorder %s718_s30, %s544_s9  ;;  %p546_p10 = pneg %p722_p8 }
  0x11   : > { %p550_p13 = scmp.lt.u32.totalorder %s718_s30, %s844_s1  ;;  %p551_p0 = scmp.lt.u32.totalorder %s549_s12, %s544_s9 }
  0x12   : > { %p547_p11 = pnand %p546_p10, %p545_p9  ;;  %p553_p2 = scmp.lt.u32.totalorder %s544_s9, %s718_s30 }
  0x13   : > { %p552_p1 = por %p551_p0, %p550_p13 }
  0x14   : > { %p548_p12 = pneg %p547_p11 }
  0x15   : > { %p554_p3 = por %p553_p2, %p552_p1 }
  0x17   : > { %p555_p4 = pnand %p554_p3, %p548_p12 }
  0x19   : > { %558 = shalt.err (!%p555_p4)
}
  0x1a   : > { %s559_s15 = scalar_lea.vmem %s720_s6, 4096  ;;  %s640_s21 = smov [#allocation4]  }
  0x1b   : > { %p560_p5 = scmp.ne.s32.totalorder %s720_s6, %s559_s15  ;;  %s564_s22 = sshll.u32 %s640_s21, 4  ;;  %s565_s22 = int_to_ptr.vmem [resolvable:$false] %s564_s22 }
  0x1c   : > { %s566_s25 = scalar_lea.vmem %s565_s22, 8192  ;;  %p567_p11 = scmp.lt.s32.totalorder %s720_s6, %s565_s22 }
  0x1d   : > { %p562_p6 = pnand %p560_p5, %p546_p10  ;;  %p568_p13 = scmp.lt.s32.totalorder %s566_s25, %s559_s15 }
  0x1f   : > { %p563_p9 = pneg %p562_p6  ;;  %p569_p0 = por %p568_p13, %p567_p11 }
  0x21   : > { %p570_p1 = pnand %p569_p0, %p563_p9 }
  0x23   : > { %573 = shalt.err (!%p570_p1)
}
  0x24   : > { %s641_s26 = smov 512   ;;  %s642_s27 = smov 256  }
  0x25   : > { %s643_s28 = smov 16   ;;  %p446_p10 = scmp.ge.s32.totalorder %s638_s18, 1 }
  0x26   : > { %498 = dma.hbm_to_vmem [thread:$0]  (!%p722_p8), %s718_s30, 4096, %s720_s6, %s726_s8, %s641_s26, %s642_s27, %s643_s28  }
  0x27   : > { %p174_p12 = scmp.lt.s32.totalorder %s638_s18, 3 }
  0x29   : > { %p175_p2 = pnand %p446_p10, %p174_p12 }
  0x2a   : > { %s180_s29 = sand.u32 (!%p175_p2), 1, %s630_s16  }
  0x2b   : > { %178 = sbr.rel (%p175_p2) target bundleno = 646 (0x286), region = 36  ;;  %s447_s5 = sshll.u32 (!%p175_p2), %s180_s29, 8 }
  0x2c   : > { %s181_s9 = scalar_lea.sflag (!%p175_p2), [#allocation5], %s180_s29  ;;  %s757_s10 = scalar_lea.vmem (!%p175_p2), [#allocation4], %s447_s5 }
  0x32   : > { %617 = dma.done.wait (%p709_p7), %s181_s9, 4096  }
  0x33   : > { %619 = vsyncadd (%p709_p7), %s181_s9, 4294963200  ;;  %p448_p3 = scmp.ne.s32.totalorder %s692_s19, 0 }
  0x34   : > { %vm209_vm0 = vcmask (!%p448_p3), 7168   ;;  %v644_v0 = vmov (!%p448_p3), 0.0  }
  0x35   : > { %208 = sbr.rel (%p448_p3) target bundleno = 60 (0x3c), region = 44  ;;  %210 = vst.msk [vmem:[#allocation2] sm:$0xff] (!%p448_p3), %vm209_vm0, %v644_v0  ;;  %211 = vst.msk [vmem:[#allocation3] sm:$0xff] (!%p448_p3), %vm209_vm0, %v644_v0 }
  0x3c PF: > { %v214_v1 = vld [vmem:[%s757_s10 + $0x8] sm:$0xff]  ;;  %v216_v2 = vld [vmem:[%s757_s10 + $0x18] sm:$0xff]  ;;  %v213_v3 = vld [vmem:[%s757_s10] sm:$0xff]  ;;  %v645_v8 = vmov 0.0   ;;  %s449_s30 = sshll.u32 %s692_s19, 8  ;;  %vm321_vm1 = vcmask 7168  }
  0x3d   : > { %v457_v4 = vpack.c.bf16 %v216_v2, %v214_v1  ;;  %v215_v5 = vld [vmem:[%s757_s10 + $0x10] sm:$0xff]  ;;  %v218_v6 = vld [vmem:[%s757_s10 + $0x28] sm:$0xff]  ;;  %v220_v7 = vld [vmem:[%s757_s10 + $0x38] sm:$0xff]  ;;  %309 = vmatprep.mubr.f32.mxu0 %v645_v8  ;;  %s332_s6 = sshra.s32 %s449_s30, 7  ;;  %p451_p7 = scmp.ne.s32.totalorder %s692_s19, 1 }
  0x3e   : > { %v459_v9 = vpack.c.bf16 %v215_v5, %v213_v3  ;;  %v461_v10 = vpack.c.bf16 %v220_v7, %v218_v6  ;;  %v217_v11 = vld [vmem:[%s757_s10 + $0x20] sm:$0xff]  ;;  %v219_v12 = vld [vmem:[%s757_s10 + $0x30] sm:$0xff]  ;;  %v222_v13 = vld [vmem:[%s757_s10 + $0x48] sm:$0xff]  ;;  %s450_s7 = sshll.u32 %s332_s6, 3  ;;  %v646_v1 = vmov (!%p451_p7), 0  }
  0x3f   : > { %458 = vmatprep.subr.bf16.mxu0 %v457_v4  ;;  %v224_v14 = vld [vmem:[%s757_s10 + $0x58] sm:$0xff]  ;;  %v463_v15 = vpack.c.bf16 %v219_v12, %v217_v11  ;;  %v221_v17 = vld [vmem:[%s757_s10 + $0x40] sm:$0xff]  ;;  %v223_v18 = vld [vmem:[%s757_s10 + $0x50] sm:$0xff]  ;;  %s335_s8 = scalar_lea.vmem [#allocation7], %s450_s7  ;;  %541 = vset.pattern.permute.xlu0 (!%p451_p7), %v646_v1 }
  0x40   : > { %460 = vmatpush1.bf16.msra.mxu0 %v459_v9  ;;  %v465_v16 = vpack.c.bf16 %v224_v14, %v222_v13  ;;  %v226_v19 = vld [vmem:[%s757_s10 + $0x68] sm:$0xff]  ;;  %v228_v20 = vld [vmem:[%s757_s10 + $0x78] sm:$0xff]  ;;  %v467_v21 = vpack.c.bf16 %v223_v18, %v221_v17  ;;  %v225_v23 = vld [vmem:[%s757_s10 + $0x60] sm:$0xff] }
  0x41   : > { %462 = vmatprep.subr.bf16.mxu0 %v461_v10  ;;  %v469_v22 = vpack.c.bf16 %v228_v20, %v226_v19  ;;  %v227_v24 = vld [vmem:[%s757_s10 + $0x70] sm:$0xff]  ;;  %v230_v25 = vld [vmem:[%s757_s10 + $0x88] sm:$0xff]  ;;  %v232_v26 = vld [vmem:[%s757_s10 + $0x98] sm:$0xff] }
  0x42   : > { %v471_v27 = vpack.c.bf16 %v227_v24, %v225_v23  ;;  %v473_v28 = vpack.c.bf16 %v232_v26, %v230_v25  ;;  %v229_v29 = vld [vmem:[%s757_s10 + $0x80] sm:$0xff]  ;;  %v231_v30 = vld [vmem:[%s757_s10 + $0x90] sm:$0xff]  ;;  %v234_v31 = vld [vmem:[%s757_s10 + $0xa8] sm:$0xff] }
  0x43   : > { %v236_v32 = vld [vmem:[%s757_s10 + $0xb8] sm:$0xff]  ;;  %v475_v33 = vpack.c.bf16 %v231_v30, %v229_v29  ;;  %v233_v35 = vld [vmem:[%s757_s10 + $0xa0] sm:$0xff]  ;;  %v235_v36 = vld [vmem:[%s757_s10 + $0xb0] sm:$0xff] }
  0x44   : > { %464 = vmatpush1.bf16.msra.mxu0 %v463_v15  ;;  %v477_v34 = vpack.c.bf16 %v236_v32, %v234_v31  ;;  %v238_v37 = vld [vmem:[%s757_s10 + $0xc8] sm:$0xff]  ;;  %v240_v38 = vld [vmem:[%s757_s10 + $0xd8] sm:$0xff]  ;;  %v479_v39 = vpack.c.bf16 %v235_v36, %v233_v35  ;;  %v237_v41 = vld [vmem:[%s757_s10 + $0xc0] sm:$0xff] }
  0x45   : > { %466 = vmatprep.subr.bf16.mxu0 %v465_v16  ;;  %v481_v40 = vpack.c.bf16 %v240_v38, %v238_v37  ;;  %v239_v42 = vld [vmem:[%s757_s10 + $0xd0] sm:$0xff]  ;;  %v242_v43 = vld [vmem:[%s757_s10 + $0xe8] sm:$0xff]  ;;  %v244_v44 = vld [vmem:[%s757_s10 + $0xf8] sm:$0xff] }
  0x46   : > { %v483_v45 = vpack.c.bf16 %v239_v42, %v237_v41  ;;  %v485_v46 = vpack.c.bf16 %v244_v44, %v242_v43  ;;  %v241_v47 = vld [vmem:[%s757_s10 + $0xe0] sm:$0xff]  ;;  %v243_v48 = vld [vmem:[%s757_s10 + $0xf0] sm:$0xff]  ;;  %v323_v60 = vld [vmem:[#allocation3] sm:$0xff] }
  0x47   : > { %v487_v49 = vpack.c.bf16 %v243_v48, %v241_v47  ;;  %v212_v50 = vld [vmem:[%s843_s0] sm:$0xff] }
  0x48   : > { %468 = vmatpush1.bf16.msra.mxu0 %v467_v21  ;;  %v316_v57 = vld [vmem:[#allocation2] sm:$0xff] }
  0x49   : > { %470 = vmatprep.subr.bf16.mxu0 %v469_v22  ;;  %v350_v7 = vld [vmem:[%s845_s2] sm:$0xff] (!%p451_p7) }
  0x4a   : > { %v352_v10 = vld [vmem:[%s846_s3] sm:$0xff] (!%p451_p7) }
  0x4c   : > { %472 = vmatpush1.bf16.msra.mxu0 %v471_v27 }
  0x4d   : > { %474 = vmatprep.subr.bf16.mxu0 %v473_v28 }
  0x50   : > { %476 = vmatpush1.bf16.msra.mxu0 %v475_v33 }
  0x51   : > { %478 = vmatprep.subr.bf16.mxu0 %v477_v34 }
  0x54   : > { %480 = vmatpush1.bf16.msra.mxu0 %v479_v39 }
  0x55   : > { %482 = vmatprep.subr.bf16.mxu0 %v481_v40 }
  0x58   : > { %484 = vmatpush1.bf16.msra.mxu0 %v483_v45 }
  0x59   : > { %486 = vmatprep.subr.bf16.mxu0 %v485_v46 }
  0x5c   : > { %488 = vmatpush1.bf16.msra.mxu0 %v487_v49 }
  0x5f   : > { %310 = vmatmul.mubr.f32.vlgmr.msra.gmra.mrb[0].mxu0 %v212_v50 }
 0x132   : > { %v311_v51 = vpop.f32.mrb[0].mxu0 }
 0x133   : > { %v313_v52 = vpop.f32.mrb[1].mxu0  ;;  %336 = vst [vmem:[%s335_s8] sm:$0xff] %v311_v51  ;;  %v324_v53 = vmul.f32 %v311_v51, %v311_v51 }
 0x134   : > { %v325_v54 = vmul.f32 %v313_v52, %v313_v52  ;;  %337 = vst [vmem:[%s335_s8 + $0x8] sm:$0xff] %v313_v52  ;;  %v317_v55 = vadd.f32 %v313_v52, %v311_v51 }
 0x136   : > { %318 = vadd.xlane.f32.xlu0 %v317_v55  ;;  %v326_v56 = vadd.f32 %v325_v54, %v324_v53 }
 0x13a   : > { %327 = vadd.xlane.f32.xlu0 %v326_v56 }
 0x13b   : > { %v355_v13 = vld [vmem:[#allocation7] sm:$0xff] (!%p451_p7)  ;;  %v356_v15 = vld [vmem:[#allocation7 + $0x8] sm:$0xff] (!%p451_p7)  ;;  %v357_v16 = vld [vmem:[#allocation7 + $0x10] sm:$0xff] (!%p451_p7) }
 0x13c   : > { %v358_v17 = vld [vmem:[#allocation7 + $0x18] sm:$0xff] (!%p451_p7) }
 0x1c3   : > { %v319_v58 = vpop.xlane.xlu0 %318 }
 0x1c4   : > { %v320_v59 = vadd.f32 %v319_v58, %v316_v57  ;;  %341 = sbr.rel (%p451_p7) target bundleno = 621 (0x26d), region = 48 }
 0x1c6   : > { %322 = vst.msk [vmem:[#allocation2] sm:$0xff] %vm321_vm1, %v320_v59 }
 0x1c7   : > { %v328_v61 = vpop.xlane.xlu0 %327 }
 0x1c8   : > { %v329_v62 = vadd.f32 %v328_v61, %v323_v60 }
 0x1ca   : > { %330 = vst.msk [vmem:[#allocation3] sm:$0xff] %vm321_vm1, %v329_v62 }
 0x1cd   : > { %v342_v63 = vld [vmem:[#allocation2] sm:$0xff] }
 0x1ce   : > { %v343_v2 = vmul.f32 0.001953125, %v342_v63 }
 0x1d0   : > { %v346_v4 = vmul.f32 %v343_v2, %v343_v2 }
 0x1d1   : > { %v344_v0 = vld [vmem:[#allocation3] sm:$0xff] }
 0x1d2   : > { %v345_v3 = vmul.f32 0.001953125, %v344_v0 }
 0x1d4   : > { %v347_v5 = vsub.f32 %v345_v3, %v346_v4 }
 0x1d6   : > { %v348_v6 = vadd.f32 1e-05, %v347_v5 }
 0x1d8   : > { %542 = vrsqrt.f32 %v348_v6 }
 0x1e2   : > { %v543_v8 = vpop.eup %542 }
 0x1e3   : > { %v351_v9 = vmul.f32 %v543_v8, %v350_v7 }
 0x1e5   : > { %361 = vperm.xlu0 %541, %v351_v9   ;;  %v353_v11 = vmul.f32 %v351_v9, %v343_v2 }
 0x1e7   : > { %v354_v12 = vsub.f32 %v352_v10, %v353_v11 }
 0x1e9   : > { %370 = vperm.xlu0 %541, %v354_v12  }
 0x264   : > { %v362_v14 = vpop.permute.xlu0 %361 }
 0x265   : > { %v364_v18 = vmul.f32 %v362_v14, %v355_v13  ;;  %v365_v19 = vmul.f32 %v362_v14, %v356_v15  ;;  %v366_v20 = vmul.f32 %v362_v14, %v357_v16  ;;  %v367_v21 = vmul.f32 %v362_v14, %v358_v17 }
 0x268   : > { %v371_v22 = vpop.permute.xlu0 %370 }
 0x269   : > { %v373_v23 = vadd.f32 %v371_v22, %v364_v18  ;;  %v374_v24 = vadd.f32 %v371_v22, %v365_v19  ;;  %v375_v25 = vadd.f32 %v371_v22, %v366_v20  ;;  %v376_v26 = vadd.f32 %v371_v22, %v367_v21 }
 0x26b   : > { %377 = vst [vmem:[#allocation7] sm:$0xff] %v373_v23  ;;  %378 = vst [vmem:[#allocation7 + $0x8] sm:$0xff] %v374_v24 }
 0x26c   : > { %379 = vst [vmem:[#allocation7 + $0x10] sm:$0xff] %v375_v25  ;;  %380 = vst [vmem:[#allocation7 + $0x18] sm:$0xff] %v376_v26 }
 0x26d PF: > { %p500_p8 = scmp.eq.s32.totalorder %s692_s19, 1  ;;  %s647_s15 = smov [#allocation7]  }
 0x26e   : > { %s388_s21 = sshll.u32 %s647_s15, 4  ;;  %s389_s21 = int_to_ptr.vmem [resolvable:$true] %s388_s21 }
 0x26f   : > { %s574_s22 = scalar_lea.vmem %s389_s21, 512  ;;  %p581_p9 = scmp.lt.s32.totalorder %s389_s21, %s389_s21 }
 0x270   : > { %p575_p4 = scmp.ne.s32.totalorder %s389_s21, %s574_s22  ;;  %p582_p11 = scmp.lt.s32.totalorder %s574_s22, %s574_s22 }
 0x272   : > { %p576_p5 = pnand %p575_p4, %p500_p8  ;;  %p583_p13 = por %p582_p11, %p581_p9 }
 0x274   : > { %p577_p6 = pneg %p576_p5 }
 0x276   : > { %p584_p0 = pnand %p583_p13, %p577_p6 }
 0x278   : > { %587 = shalt.err (!%p584_p0)
}
 0x279   : > { %s588_s27 = scalar_lea.hbm %s847_s4, 512 }
 0x27a   : > { %p589_p1 = scmp.ne.s32.totalorder %s847_s4, %s588_s27  ;;  %p594_p2 = scmp.lt.u32.totalorder %s588_s27, %s847_s4 }
 0x27c   : > { %p590_p10 = pnand %p589_p1, %p500_p8 }
 0x27e   : > { %p591_p12 = pneg %p590_p10 }
 0x280   : > { %p596_p3 = pnand %p594_p2, %p591_p12 }
 0x282   : > { %599 = shalt.err (!%p596_p3)
}
 0x283   : > { %492 = dma.vmem_to_hbm [thread:$0]  (%p500_p8), %s389_s21, 512, %s847_s4, [#allocation6]  }
 0x284   : > { %621 = dma.done.wait (%p500_p8), [#allocation6], 512  }
 0x285   : > { %623 = vsyncadd (%p500_p8), [#allocation6], 4294966784 }
 0x286 PF: > { %p15_p7 = scmp.ge.s32.totalorder %s695_s20, 4   ;;  %s850_s15 = smov %s630_s16 }
 0x287   : > { %s851_s16 = smov %s634_s17  ;;  %s852_s17 = smov %s705_s23 }
 0x288   : > { %s853_s18 = smov %s695_s20  ;;  %17 = sbr.rel (!%p15_p7) target bundleno = 4 (0x4), region = 82 }
 0x28f   :  { %401 = vsyncpa [#allocation5], 1 }
 0x290   :  { %403 = vsyncpa [#allocation5 + $0x1], 1 }
 0x291   :  { %404 = vsyncpa [#allocation6], 1 }
 0x292   :  { %406 = vsyncpa [#allocation6 + $0x1], 1 }

</bundles_post_ra>
